<compile_context>
chip_gen: v7x
topology: tpu7x:2x2x1
jax: 0.10.0
libtpu: 0.0.40
codegen_flags: <defaults>
</compile_context>

<pallas_src>
import jax
import jax.numpy as jnp
from jax.experimental import pallas as pl
from jax.experimental.pallas import tpu as pltpu

LANE = 128
SUBLANE = 8


def _round_up(x, m):
    return (x + m - 1) // m * m


def _choose_batch_tile(batch):
    """Batch tile for the grid.

    Batch is the *lane* axis of the transposed output block, so any tile used
    with grid > 1 must be a multiple of 128 (a tile equal to the full batch is
    always legal).
    """
    if batch <= LANE:
        return batch                                   # single block, grid == 1
    if batch <= 4096:
        # two balanced 128-multiple tiles -> even grid of 2 (both v7x TCs busy)
        return _round_up(pl.cdiv(batch, 2), LANE)
    # very large batches: big tiles amortize per-step pipeline overhead
    return 2048


def _qnet_kernel(x_ref, w1_ref, b1_ref, w2_ref, b2_ref, w3t_ref, b3t_ref, o_ref):
    # bf16 operands on the MXU, f32 accumulation + bias + ReLU on the VPU.
    x = x_ref[...].astype(jnp.bfloat16)                        # in-kernel cast
    h1 = jnp.dot(x, w1_ref[...], preferred_element_type=jnp.float32) + b1_ref[...]
    h1 = jnp.maximum(h1, 0.0).astype(jnp.bfloat16)
    h2 = jnp.dot(h1, w2_ref[...], preferred_element_type=jnp.float32) + b2_ref[...]
    h2 = jnp.maximum(h2, 0.0).astype(jnp.bfloat16)
    # Layer 3, output-transposed: (out_dim, h2) . (tile, h2)^T -> (out_dim, tile).
    # Keeps the HBM store fully lane-dense (batch on the lane axis) and f32.
    out_t = jax.lax.dot_general(
        w3t_ref[...], h2,
        dimension_numbers=(((1,), (1,)), ((), ())),
        preferred_element_type=jnp.float32,
    ) + b3t_ref[...]
    o_ref[...] = out_t


def prepare_qnet_params(w1, b1, w2, b2, w3, b3):
    """One-time parameter prep, hoisted out of the hot forward path.

    Inputs are PyTorch nn.Linear layout: w_i (out_features, in_features) f32,
    b_i (out_features,) f32.  Returns the kernel-ready pytree:
      w1k (in,256) bf16, b1k (1,256) f32, w2k (256,128) bf16, b2k (1,128) f32,
      w3t (out,128) bf16 (already in the transposed layer-3 layout),
      b3t (out,1) f32.
    """
    return (
        jnp.asarray(w1).T.astype(jnp.bfloat16),
        jnp.asarray(b1).reshape(1, -1).astype(jnp.float32),
        jnp.asarray(w2).T.astype(jnp.bfloat16),
        jnp.asarray(b2).reshape(1, -1).astype(jnp.float32),
        jnp.asarray(w3).astype(jnp.bfloat16),
        jnp.asarray(b3).reshape(-1, 1).astype(jnp.float32),
    )


@jax.jit
def qnetwork_forward(x, params):
    """x: (B, input_size) f32.  params: output of prepare_qnet_params()."""
    w1, b1, w2, b2, w3t, b3t = params
    B, in_dim = x.shape
    h1_dim = w1.shape[1]
    h2_dim = w2.shape[1]
    out_dim = w3t.shape[0]

    tile = _choose_batch_tile(B)
    grid = (pl.cdiv(B, tile),)

    flops = 2 * B * (in_dim * h1_dim + h1_dim * h2_dim + h2_dim * out_dim)
    bytes_accessed = (
        x.size * 4
        + w1.size * 2 + w2.size * 2 + w3t.size * 2
        + b1.size * 4 + b2.size * 4 + b3t.size * 4
        + out_dim * B * 4
    )
    cost = pl.CostEstimate(flops=flops, transcendentals=0,
                           bytes_accessed=bytes_accessed)

    out_t = pl.pallas_call(
        _qnet_kernel,
        out_shape=jax.ShapeDtypeStruct((out_dim, B), jnp.float32),
        grid_spec=pltpu.PrefetchScalarGridSpec(
            num_scalar_prefetch=0,
            grid=grid,
            in_specs=[
                # activations: tiled over batch rows; f32, cast in-kernel
                pl.BlockSpec((tile, in_dim), lambda i: (i, 0)),
                # weights / biases: whole arrays, VMEM-resident across the grid
                pl.BlockSpec((in_dim, h1_dim), lambda i: (0, 0)),
                pl.BlockSpec((1, h1_dim), lambda i: (0, 0)),
                pl.BlockSpec((h1_dim, h2_dim), lambda i: (0, 0)),
                pl.BlockSpec((1, h2_dim), lambda i: (0, 0)),
                pl.BlockSpec((out_dim, h2_dim), lambda i: (0, 0)),
                pl.BlockSpec((out_dim, 1), lambda i: (0, 0)),
            ],
            # transposed output: batch is the lane axis -> dense, un-padded store
            out_specs=pl.BlockSpec((out_dim, tile), lambda i: (0, i)),
        ),
        compiler_params=pltpu.CompilerParams(
            dimension_semantics=("parallel",),
            vmem_limit_bytes=32 * 1024 * 1024,
        ),
        cost_estimate=cost,
    )(x, w1, b1, w2, b2, w3t, b3t)

    # tiny (out_dim, B) -> (B, out_dim) transpose restores the PyTorch layout
    return out_t.T


def init_linear_params(key, in_features, out_features):
    """PyTorch nn.Linear default init: U(+-1/sqrt(in)); weight (out, in)."""
    kw, kb = jax.random.split(key)
    bound = 1.0 / jnp.sqrt(jnp.float32(in_features))
    w = jax.random.uniform(kw, (out_features, in_features), jnp.float32, -bound, bound)
    b = jax.random.uniform(kb, (out_features,), jnp.float32, -bound, bound)
    return w, b


def reference_forward(x, w1, b1, w2, b2, w3, b3):
    # Precision-matched reference: bf16 matmul operands, f32 accumulation,
    # f32 bias / ReLU, f32 output (same as the kernel).
    h1 = jnp.dot(x.astype(jnp.bfloat16), w1.T.astype(jnp.bfloat16),
                 preferred_element_type=jnp.float32) + b1
    h1 = jnp.maximum(h1, 0.0).astype(jnp.bfloat16)
    h2 = jnp.dot(h1, w2.T.astype(jnp.bfloat16),
                 preferred_element_type=jnp.float32) + b2
    h2 = jnp.maximum(h2, 0.0).astype(jnp.bfloat16)
    return jnp.dot(h2, w3.T.astype(jnp.bfloat16),
                   preferred_element_type=jnp.float32) + b3


if __name__ == "__main__":
    key = jax.random.PRNGKey(0)
    k_x, k_x2, k1, k2, k3 = jax.random.split(key, 5)

    input_size = 32
    output_size = 8

    w1, b1 = init_linear_params(k1, input_size, 256)
    w2, b2 = init_linear_params(k2, 256, 128)
    w3, b3 = init_linear_params(k3, 128, output_size)

    # one-time weight prep, outside the hot path
    params = prepare_qnet_params(w1, b1, w2, b2, w3, b3)

    # small batch: whole batch as a single block (grid == 1)
    batch = 8
    x = jax.random.normal(k_x, (batch, input_size), jnp.float32)
    out = jax.block_until_ready(qnetwork_forward(x, params))
    ref = reference_forward(x, w1, b1, w2, b2, w3, b3)
    assert out.shape == (batch, output_size)
    assert jnp.allclose(out, ref, atol=2e-3, rtol=2e-3), "mismatch vs reference (small batch)"

    # larger, non-divisible batch: 128-multiple tile, even grid of 2,
    # tail-block rows are garbage on load and dropped by the masked store
    batch2 = 300
    x2 = jax.random.normal(k_x2, (batch2, input_size), jnp.float32)
    out2 = jax.block_until_ready(qnetwork_forward(x2, params))
    ref2 = reference_forward(x2, w1, b1, w2, b2, w3, b3)
    assert out2.shape == (batch2, output_size)
    assert jnp.allclose(out2, ref2, atol=2e-3, rtol=2e-3), "mismatch vs reference (large batch)"

    print("KERNEL_OK")
</pallas_src>

<mosaic_0001>
module attributes {stable_mosaic.version = 11 : i64} {
  func.func @_qnet_kernel(%arg0: i32, %arg1: memref<8x32xf32, #tpu.memory_space<vmem>>, %arg2: memref<32x256xbf16, #tpu.memory_space<vmem>>, %arg3: memref<1x256xf32, #tpu.memory_space<vmem>>, %arg4: memref<256x128xbf16, #tpu.memory_space<vmem>>, %arg5: memref<1x128xf32, #tpu.memory_space<vmem>>, %arg6: memref<8x128xbf16, #tpu.memory_space<vmem>>, %arg7: memref<8x1xf32, #tpu.memory_space<vmem>>, %arg8: memref<8x8xf32, #tpu.memory_space<vmem>>) attributes {dimension_semantics = [#tpu.dimension_semantics<parallel>], iteration_bounds = array<i64: 1>, scalar_prefetch = 0 : i64, scratch_operands = 0 : i64, tpu.core_type = #tpu.core_type<tc>, window_params = [{transform_indices = @transform_0, window_bounds = array<i64: 8, 32>}, {pipeline_mode = #tpu.pipeline_mode<synchronous>, transform_indices = @transform_1, window_bounds = array<i64: 32, 256>}, {pipeline_mode = #tpu.pipeline_mode<synchronous>, transform_indices = @transform_2, window_bounds = array<i64: 1, 256>}, {pipeline_mode = #tpu.pipeline_mode<synchronous>, transform_indices = @transform_3, window_bounds = array<i64: 256, 128>}, {pipeline_mode = #tpu.pipeline_mode<synchronous>, transform_indices = @transform_4, window_bounds = array<i64: 1, 128>}, {pipeline_mode = #tpu.pipeline_mode<synchronous>, transform_indices = @transform_5, window_bounds = array<i64: 8, 128>}, {pipeline_mode = #tpu.pipeline_mode<synchronous>, transform_indices = @transform_6, window_bounds = array<i64: 8, 1>}, {transform_indices = @transform_7, window_bounds = array<i64: 8, 8>}]} {
    %c0 = arith.constant 0 : index
    %c0_0 = arith.constant 0 : index
    %0 = vector.load %arg1[%c0, %c0_0] : memref<8x32xf32, #tpu.memory_space<vmem>>, vector<8x32xf32>
    %1 = arith.truncf %0 : vector<8x32xf32> to vector<8x32xbf16>
    %c0_1 = arith.constant 0 : index
    %c0_2 = arith.constant 0 : index
    %2 = vector.load %arg2[%c0_1, %c0_2] : memref<32x256xbf16, #tpu.memory_space<vmem>>, vector<32x256xbf16>
    %cst = arith.constant dense<0.000000e+00> : vector<8x256xf32>
    %3 = tpu.matmul %1, %2, %cst {dimension_numbers = #tpu.dot_dimension_numbers<[1], [0], [0], [1], [0, 0, 1, 1], [], []>} : vector<8x32xbf16>, vector<32x256xbf16>, vector<8x256xf32> -> vector<8x256xf32>
    %c0_3 = arith.constant 0 : index
    %c0_4 = arith.constant 0 : index
    %4 = vector.load %arg3[%c0_3, %c0_4] : memref<1x256xf32, #tpu.memory_space<vmem>>, vector<1x256xf32>
    %5 = vector.broadcast %4 : vector<1x256xf32> to vector<8x256xf32>
    %6 = arith.addf %3, %5 : vector<8x256xf32>
    %cst_5 = arith.constant 0.000000e+00 : f32
    %7 = vector.broadcast %cst_5 : f32 to vector<8x256xf32>
    %8 = arith.maximumf %6, %7 : vector<8x256xf32>
    %9 = arith.truncf %8 : vector<8x256xf32> to vector<8x256xbf16>
    %c0_6 = arith.constant 0 : index
    %c0_7 = arith.constant 0 : index
    %10 = vector.load %arg4[%c0_6, %c0_7] : memref<256x128xbf16, #tpu.memory_space<vmem>>, vector<256x128xbf16>
    %cst_8 = arith.constant dense<0.000000e+00> : vector<8x128xf32>
    %11 = tpu.matmul %9, %10, %cst_8 {dimension_numbers = #tpu.dot_dimension_numbers<[1], [0], [0], [1], [0, 0, 1, 1], [], []>} : vector<8x256xbf16>, vector<256x128xbf16>, vector<8x128xf32> -> vector<8x128xf32>
    %c0_9 = arith.constant 0 : index
    %c0_10 = arith.constant 0 : index
    %12 = vector.load %arg5[%c0_9, %c0_10] : memref<1x128xf32, #tpu.memory_space<vmem>>, vector<1x128xf32>
    %13 = vector.broadcast %12 : vector<1x128xf32> to vector<8x128xf32>
    %14 = arith.addf %11, %13 : vector<8x128xf32>
    %cst_11 = arith.constant 0.000000e+00 : f32
    %15 = vector.broadcast %cst_11 : f32 to vector<8x128xf32>
    %16 = arith.maximumf %14, %15 : vector<8x128xf32>
    %17 = arith.truncf %16 : vector<8x128xf32> to vector<8x128xbf16>
    %c0_12 = arith.constant 0 : index
    %c0_13 = arith.constant 0 : index
    %18 = vector.load %arg6[%c0_12, %c0_13] : memref<8x128xbf16, #tpu.memory_space<vmem>>, vector<8x128xbf16>
    %cst_14 = arith.constant dense<0.000000e+00> : vector<8x8xf32>
    %19 = tpu.matmul %18, %17, %cst_14 {dimension_numbers = #tpu.dot_dimension_numbers<[1], [1], [0], [0], [0, 0, 1, 0], [], []>} : vector<8x128xbf16>, vector<8x128xbf16>, vector<8x8xf32> -> vector<8x8xf32>
    %c0_15 = arith.constant 0 : index
    %c0_16 = arith.constant 0 : index
    %20 = vector.load %arg7[%c0_15, %c0_16] : memref<8x1xf32, #tpu.memory_space<vmem>>, vector<8x1xf32>
    %21 = vector.broadcast %20 : vector<8x1xf32> to vector<8x8xf32>
    %22 = arith.addf %19, %21 : vector<8x8xf32>
    %c0_17 = arith.constant 0 : index
    %c0_18 = arith.constant 0 : index
    %23 = vector.load %arg8[%c0_17, %c0_18] : memref<8x8xf32, #tpu.memory_space<vmem>>, vector<8x8xf32>
    tpu.vector_store %arg8[%c0_17, %c0_18], %22 {strides = array<i32>} : memref<8x8xf32, #tpu.memory_space<vmem>>, vector<8x8xf32>,
    return
  }
  func.func @transform_0(%arg0: i32) -> (i32, i32) {
    %c0_i32 = arith.constant 0 : i32
    %c0_i32_0 = arith.constant 0 : i32
    return %arg0, %c0_i32 : i32, i32
  }
  func.func @transform_1(%arg0: i32) -> (i32, i32) {
    %c0_i32 = arith.constant 0 : i32
    %c0_i32_0 = arith.constant 0 : i32
    %c0_i32_1 = arith.constant 0 : i32
    return %c0_i32, %c0_i32_0 : i32, i32
  }
  func.func @transform_2(%arg0: i32) -> (i32, i32) {
    %c0_i32 = arith.constant 0 : i32
    %c0_i32_0 = arith.constant 0 : i32
    %c0_i32_1 = arith.constant 0 : i32
    return %c0_i32, %c0_i32_0 : i32, i32
  }
  func.func @transform_3(%arg0: i32) -> (i32, i32) {
    %c0_i32 = arith.constant 0 : i32
    %c0_i32_0 = arith.constant 0 : i32
    %c0_i32_1 = arith.constant 0 : i32
    return %c0_i32, %c0_i32_0 : i32, i32
  }
  func.func @transform_4(%arg0: i32) -> (i32, i32) {
    %c0_i32 = arith.constant 0 : i32
    %c0_i32_0 = arith.constant 0 : i32
    %c0_i32_1 = arith.constant 0 : i32
    return %c0_i32, %c0_i32_0 : i32, i32
  }
  func.func @transform_5(%arg0: i32) -> (i32, i32) {
    %c0_i32 = arith.constant 0 : i32
    %c0_i32_0 = arith.constant 0 : i32
    %c0_i32_1 = arith.constant 0 : i32
    return %c0_i32, %c0_i32_0 : i32, i32
  }
  func.func @transform_6(%arg0: i32) -> (i32, i32) {
    %c0_i32 = arith.constant 0 : i32
    %c0_i32_0 = arith.constant 0 : i32
    %c0_i32_1 = arith.constant 0 : i32
    return %c0_i32, %c0_i32_0 : i32, i32
  }
  func.func @transform_7(%arg0: i32) -> (i32, i32) {
    %c0_i32 = arith.constant 0 : i32
    %c0_i32_0 = arith.constant 0 : i32
    return %c0_i32, %arg0 : i32, i32
  }
}

</mosaic_0001>

<bundles_post_ra>
// kernel: qnetwork_forward.1
= control target key start
LH: loop header
LB: loop body
LE: loop exit
PB: predicated region body
PF: predicated region fallthrough
CT: control target
= control target key end

     0   :  { %12 = vsyncpa [#allocation3], 0  ;;  %s597_s0 = inlined_call_operand.vmem [shape: f32[8,32], index: 0, kind: input, shape index: {}]   ;;  %s598_s1 = inlined_call_operand.hbm [shape: bf16[32,256], index: 1, kind: input, shape index: {}]   ;;  %s599_s2 = inlined_call_operand.vmem [shape: f32[1,256], index: 2, kind: input, shape index: {}]   ;;  %s600_s3 = inlined_call_operand.hbm [shape: bf16[256,128], index: 3, kind: input, shape index: {}]   ;;  %s601_s4 = inlined_call_operand.vmem [shape: f32[1,128], index: 4, kind: input, shape index: {}]   ;;  %s602_s5 = inlined_call_operand.vmem [shape: bf16[8,128], index: 5, kind: input, shape index: {}]   ;;  %s603_s6 = inlined_call_operand.vmem [shape: f32[8,1], index: 6, kind: input, shape index: {}]   ;;  %s604_s7 = inlined_call_operand.vmem [shape: f32[8,8], index: 7, kind: output, shape index: {}]  }
   0x1   :  { %13 = vsyncpa [#allocation5], 0  ;;  %s506_s24 = smov [#allocation2]   ;;  %s458_s28 = scalar_lea.hbm %s598_s1, 512 }
   0x2   :  { %s21_s25 = sshll.u32 %s506_s24, 4  ;;  %p459_p0 = scmp.ne.s32.totalorder %s598_s1, %s458_s28  ;;  %s22_s25 = int_to_ptr.vmem [resolvable:$true] %s21_s25 }
   0x3   :  { %p462_p1 = scmp.lt.u32.totalorder %s458_s28, %s598_s1 }
   0x5   :  { %p464_p2 = pnand %p462_p1, %p459_p0 }
   0x7   :  { %467 = shalt.err (!%p464_p2)
}
   0x8   :  { %s468_s10 = scalar_lea.vmem %s22_s25, 512  ;;  %p473_p4 = scmp.lt.s32.totalorder %s22_s25, %s22_s25 }
   0x9   :  { %p469_p3 = scmp.ne.s32.totalorder %s22_s25, %s468_s10  ;;  %p474_p5 = scmp.lt.s32.totalorder %s468_s10, %s468_s10 }
   0xb   :  { %p475_p6 = por %p474_p5, %p473_p4 }
   0xd   :  { %p476_p7 = pnand %p475_p6, %p469_p3 }
   0xf   :  { %479 = shalt.err (!%p476_p7)
}
  0x10   :  { %s507_s11 = smov 128   ;;  %s508_s12 = smov 8  }
  0x11   :  { %27 = dma.hbm_to_vmem [thread:$0]  %s598_s1, 512, %s22_s25, [#allocation3], %s507_s11, %s507_s11, %s508_s12  }
  0x12   :  { %s509_s15 = smov [#allocation4]   ;;  %s480_s19 = scalar_lea.hbm %s600_s3, 2048 }
  0x13   :  { %s35_s16 = sshll.u32 %s509_s15, 4  ;;  %p481_p8 = scmp.ne.s32.totalorder %s600_s3, %s480_s19  ;;  %s36_s16 = int_to_ptr.vmem [resolvable:$true] %s35_s16 }
  0x14   :  { %p484_p9 = scmp.lt.u32.totalorder %s480_s19, %s600_s3 }
  0x16   :  { %p486_p10 = pnand %p484_p9, %p481_p8 }
  0x18   :  { %489 = shalt.err (!%p486_p10)
}
  0x19   :  { %s490_s24 = scalar_lea.vmem %s36_s16, 2048  ;;  %p495_p12 = scmp.lt.s32.totalorder %s36_s16, %s36_s16 }
  0x1a   :  { %p491_p11 = scmp.ne.s32.totalorder %s36_s16, %s490_s24  ;;  %p496_p13 = scmp.lt.s32.totalorder %s490_s24, %s490_s24 }
  0x1c   :  { %p497_p0 = por %p496_p13, %p495_p12 }
  0x1e   :  { %p498_p1 = pnand %p497_p0, %p491_p11 }
  0x20   :  { %501 = shalt.err (!%p498_p1)
}
  0x21   :  { %s510_s1 = smov 64   ;;  %s511_s25 = smov 4  }
  0x22   :  { %41 = dma.hbm_to_vmem [thread:$0]  %s600_s3, 2048, %s36_s16, [#allocation5], %s510_s1, %s510_s1, %s511_s25  }
  0x23   :  { %502 = dma.done.wait [#allocation3], 512  }
  0x24   :  { %503 = vsyncadd [#allocation3], 4294966784 }
  0x25   :  { %504 = dma.done.wait [#allocation5], 2048  }
  0x26   :  { %505 = vsyncadd [#allocation5], 4294965248  ;;  %v512_v0 = vmov 0   ;;  %v436_v1 = vld [vmem:[#allocation2 + $0x4] ss:$8 sps:$4 sm:$0xff]   ;;  %vm93_vm0 = vcmask 261120   ;;  %v63_v23 = vlaneseq }
  0x27   :  { %129 = vmatprep.mubr.bf16.mxu0 %v512_v0  ;;  %435 = vset.pattern.permute.xlu0 %v512_v0  ;;  %v438_v2 = vld [vmem:[#allocation2] ss:$8 sps:$4 sm:$0xff]   ;;  %v439_v3 = vld [vmem:[#allocation2 + $0x14] ss:$8 sps:$4 sm:$0xff]   ;;  %v441_v4 = vld [vmem:[#allocation2 + $0x10] ss:$8 sps:$4 sm:$0xff]  }
  0x28   :  { %97 = vmatprep.subr.bf16.mxu0 %v436_v1  ;;  %v55_v5 = vld [vmem:[%s597_s0] sm:$0xff]  ;;  %v444_v8 = vld [vmem:[#allocation4 + $0x48] sm:$0xff]   ;;  %v446_v11 = vld [vmem:[#allocation4 + $0x50] sm:$0xff]   ;;  %v64_v24 = vshrl.u32 %v63_v23, 7  ;;  %v513_v40 = vmov 0.0   ;;  %vm514_vm1 = vmmov 0  }
  0x29   :  { %98 = vmatpush1.bf16.msra.mxu0 %v438_v2  ;;  %v442_v6 = vld [vmem:[#allocation4 + $0x40] sm:$0xff]   ;;  %v56_v9 = vpack.c.bf16 %v55_v5, %v55_v5  ;;  %v445_v10 = vld [vmem:[#allocation4 + $0x8] sm:$0xff]   ;;  %v447_v12 = vld [vmem:[#allocation4 + $0x10] sm:$0xff]   ;;  %vm366_vm2 = vcmask 64512  }
  0x2a   :  { %99 = vmatprep.subr.bf16.mxu0 %v439_v3  ;;  %v443_v7 = vld [vmem:[#allocation4] sm:$0xff]   ;;  %396 = vmatprep.subr.bf16.mxu1 %v442_v6  ;;  %v448_v13 = vld [vmem:[#allocation4 + $0x58] sm:$0xff]   ;;  %v452_v17 = vld [vmem:[#allocation4 + $0x68] sm:$0xff]   ;;  %v65_v25 = vsub.s32 0, %v64_v24  ;;  %v69_v27 = vsub.s32 1, %v64_v24 }
  0x2b   :  { %397 = vmatpush3.bf16.msra.mxu1 %v443_v7  ;;  %v449_v14 = vld [vmem:[#allocation4 + $0x18] sm:$0xff]   ;;  %v450_v15 = vld [vmem:[#allocation4 + $0x60] sm:$0xff]   ;;  %v453_v18 = vld [vmem:[#allocation4 + $0x28] sm:$0xff]  }
  0x2c   :  { %398 = vmatprep.subr.bf16.mxu1 %v444_v8  ;;  %v451_v16 = vld [vmem:[#allocation4 + $0x20] sm:$0xff]   ;;  %v454_v19 = vld [vmem:[#allocation4 + $0x70] sm:$0xff]   ;;  %v456_v21 = vld [vmem:[#allocation4 + $0x78] sm:$0xff]  }
  0x2d   :  { %100 = vmatpush1.bf16.msra.mxu0 %v441_v4  ;;  %v455_v20 = vld [vmem:[#allocation4 + $0x30] sm:$0xff]   ;;  %v457_v22 = vld [vmem:[#allocation4 + $0x38] sm:$0xff]   ;;  %v61_v26 = vld [vmem:[%s599_s2] sm:$0x3] }
  0x2e   :  { %v66_v28 = vrot.slane %v61_v26, %v65_v25  ;;  %v70_v29 = vrot.slane %v61_v26, %v69_v27  ;;  %420 = vmatprep.subr.bf16.mxu0 %v513_v40  ;;  %v320_v41 = vld [vmem:[%s603_s6] sm:$0xff] }
  0x2f   :  { %399 = vmatpush3.bf16.msra.mxu1 %v445_v10  ;;  %323 = vperm.xlu0 %435, %v320_v41   ;;  %v379_v43 = vld [vmem:[%s601_s4] ss:$0 sm:$0xff] }
  0x30   :  { %378 = vmatmul.mubr.msk.bf16.vlgmr.msra.gmra.mrb[0].mxu0 %vm93_vm0, %v56_v9  ;;  %400 = vmatprep.subr.bf16.mxu1 %v446_v11  ;;  %v319_v51 = vld [vmem:[%s602_s5] sm:$0xf] }
  0x31   :  { %422 = vmatprep.mubr.msk.bf16.mxu0 %vm514_vm1, %v513_v40 }
  0x33   :  { %401 = vmatpush3.bf16.msra.mxu1 %v447_v12 }
  0x34   :  { %402 = vmatprep.subr.bf16.mxu1 %v448_v13 }
  0x37   :  { %403 = vmatpush3.bf16.msra.mxu1 %v449_v14 }
  0x38   :  { %404 = vmatprep.subr.bf16.mxu1 %v450_v15 }
  0x3b   :  { %405 = vmatpush3.bf16.msra.mxu1 %v451_v16 }
  0x3c   :  { %406 = vmatprep.subr.bf16.mxu1 %v452_v17 }
  0x3f   :  { %407 = vmatpush3.bf16.msra.mxu1 %v453_v18 }
  0x40   :  { %408 = vmatprep.subr.bf16.mxu1 %v454_v19 }
  0x43   :  { %409 = vmatpush3.bf16.msra.mxu1 %v455_v20 }
  0x44   :  { %410 = vmatprep.subr.bf16.mxu1 %v456_v21 }
  0x47   :  { %411 = vmatpush3.bf16.msra.mxu1 %v457_v22 }
  0xae   :  { %v324_v52 = vpop.permute.xlu0 %323 }
 0x103   :  { %v131_v30 = vpop.f32.mrb[0].mxu0 }
 0x104   :  { %v132_v31 = vadd.f32 %v131_v30, %v66_v28  ;;  %v133_v32 = vpop.f32.mrb[1].mxu0 }
 0x105   :  { %v134_v33 = vadd.f32 %v133_v32, %v70_v29  ;;  %v135_v34 = vpop.f32.mrb[2].mxu0 }
 0x106   :  { %v138_v35 = vmax.f32 %v132_v31, 0.0  ;;  %v136_v36 = vpop.f32.mrb[3].mxu0 }
 0x107   :  { %v139_v37 = vmax.f32 %v134_v33, 0.0 }
 0x108   :  { %v140_v39 = vpack.c.bf16 %v138_v35, %v138_v35 }
 0x109   :  { %v141_v38 = vpack.c.bf16 %v139_v37, %v139_v37 }
 0x10b   :  { %309 = vmatprep.mubr.bf16.mxu1 %v141_v38 }
 0x10c   :  { %310 = vmatmul.mubr.bf16.vlgmr.msra.gmra.mrb[0].mxu1 %v140_v39 }
 0x1df   :  { %v412_v42 = vpop.f32.mrb[0].mxu1 }
 0x1e0   :  { %v413_v44 = vpop.f32.mrb[1].mxu1 }
 0x1e1   :  { %v414_v45 = vadd.f32 %v413_v44, %v412_v42  ;;  %v415_v46 = vpop.f32.mrb[2].mxu1 }
 0x1e2   :  { %v416_v47 = vpop.f32.mrb[3].mxu1 }
 0x1e3   :  { %v312_v48 = vadd.f32 %v414_v45, %v379_v43 }
 0x1e5   :  { %v317_v49 = vmax.f32 %v312_v48, 0.0 }
 0x1e7   :  { %v318_v50 = vpack.c.bf16 %v317_v49, %v317_v49 }
 0x1e9   :  { %421 = vmatpush3.bf16.xpose.msra.mxu0 %v318_v50 }
 0x1f0   :  { %423 = vmatmul.mubr.bf16.vlgmr.msra.gmra.mrb[4].mxu0 %v319_v51 }
 0x2c3   :  { %v360_v53 = vpop.f32.mrb[4].mxu0 }
 0x2c4   :  { %v361_v54 = vadd.f32 %v360_v53, %v324_v52  ;;  %v424_v55 = vpop.f32.mrb[5].mxu0 }
 0x2c5   :  { %v363_v56 = vpop.f32.mrb[6].mxu0 }
 0x2c6   :  { %367 = vst.msk [vmem:[%s604_s7] sm:$0xff] %vm366_vm2, %v361_v54  ;;  %v425_v57 = vpop.f32.mrb[7].mxu0 }
 0x2c7   :  { %372 = vsyncpa [#allocation3], 1 }
 0x2c8   :  { %373 = vsyncpa [#allocation5], 1 }

</bundles_post_ra>
